<compile_context>
chip_gen: v7x
topology: tpu7x:2x2x1
jax: 0.10.0
libtpu: 0.0.40
codegen_flags: <defaults>
</compile_context>

<pallas_src>
import math

import jax
import jax.numpy as jnp
from jax.experimental import pallas as pl
from jax.experimental.pallas import tpu as pltpu

_HALF_LOG_2PI = 0.5 * math.log(2.0 * math.pi)


def _gauss_vector_kernel(xw_ref, rhs_ref, out_ref):
    """xw_ref: (TB, 2D) = [x | w]; rhs_ref: (3D, K); out_ref: (TB, K)."""
    D = xw_ref.shape[1] // 2
    xw = xw_ref[...]
    x = xw[:, :D]                     # local inputs
    w = xw[:, D:]                     # 1 - clamp(marginalized, 0, 1), precomputed
    wx = w * x
    # Single MXU pass: lane-concat the three (TB, D) chunks into one (TB, 3D) LHS.
    lhs = jnp.concatenate([wx * x, wx, w], axis=-1)
    out_ref[...] = jnp.dot(lhs, rhs_ref[...], preferred_element_type=jnp.float32)


def _round_up(n, m):
    return ((n + m - 1) // m) * m


def gauss_vector_forward(inputs, marginalized, means, sigma_params, scope,
                         min_sigma, max_sigma, max_mean=None, min_mean=None,
                         block_b=1024):
    """JAX wrapper: scope gather + (D,K) parameter prep as glue, Pallas MXU hot path.

    block_b: batch tile (multiple of 8); 1024-2048 amortizes per-grid-step overhead.
    """
    scope = jnp.asarray(scope, dtype=jnp.int32)
    x_local = inputs[:, scope].astype(jnp.float32)            # (B, D)  gather glue
    B, D = x_local.shape
    if marginalized is None:
        weight = jnp.ones_like(x_local)
    else:
        weight = 1.0 - jnp.clip(marginalized[:, scope].astype(jnp.float32), 0.0, 1.0)

    # Single packed input stream: [x | w]  -> one BlockSpec / one DMA per grid step.
    xw = jnp.concatenate([x_local, weight], axis=1)           # (B, 2D)

    # Mean transform, matching the torch branching exactly.
    mu = means.astype(jnp.float32)
    if max_mean is not None:                                  # sigmoid(means) * max_mean
        mu = jax.nn.sigmoid(means.astype(jnp.float32)) * max_mean
    if min_mean is not None:                                  # sigmoid(means) + min_mean
        mu = jax.nn.sigmoid(mu) + min_mean

    K = mu.shape[1]

    # sigma-derived terms computed ONCE at (D, K); sigma==1 branch skips log/recip.
    if float(min_sigma) < float(max_sigma):
        sigma = (float(min_sigma)
                 + (float(max_sigma) - float(min_sigma))
                 * jax.nn.sigmoid(sigma_params.astype(jnp.float32)))
        inv_sigma = 1.0 / sigma
        quad_row = -0.5 * inv_sigma
        lin_row = mu * inv_sigma
        const_row = -0.5 * mu * mu * inv_sigma - 0.5 * jnp.log(sigma) - _HALF_LOG_2PI
    else:
        quad_row = jnp.full_like(mu, -0.5)
        lin_row = mu
        const_row = -0.5 * mu * mu - _HALF_LOG_2PI

    rhs = jnp.concatenate([quad_row, lin_row, const_row], axis=0)   # (3D, K)

    # Batch tile: multiple of 8 sublanes; ragged last tile handled by Pallas (no jnp.pad
    # of the batch -> no extra HBM read+write of the whole input).
    TB = _round_up(min(block_b, B), 8)
    grid = (pl.cdiv(B, TB),)

    cost = pl.CostEstimate(
        flops=2 * B * 3 * D * K,
        transcendentals=0,
        bytes_accessed=(B * 2 * D + 3 * D * K + B * K) * 4,
    )

    out = pl.pallas_call(
        _gauss_vector_kernel,
        out_shape=jax.ShapeDtypeStruct((B, K), jnp.float32),
        grid=grid,
        in_specs=[
            pl.BlockSpec((TB, 2 * D), lambda i: (i, 0)),   # packed [x | w]
            pl.BlockSpec((3 * D, K), lambda i: (0, 0)),    # stacked coefficients (grid-invariant)
        ],
        out_specs=pl.BlockSpec((TB, K), lambda i: (i, 0)),  # K == full dim: no lane padding,
                                                            # no HBM write amplification
        compiler_params=pltpu.CompilerParams(
            dimension_semantics=("parallel",)),             # megacore sharding hint
        cost_estimate=cost,
    )(xw, rhs)

    # TODO(synk): fuse all RAT-SPN leaf regions into one pallas_call (stack regions along
    # K and the 3D contraction axis) so per-call/gather overhead is amortized, output K
    # becomes naturally lane-dense, and the resident fused RHS can use pl.Buffered(1).
    # TODO(synk): on v7x, verify the batch axis actually shards across both TensorCores
    # (try pltpu.CORE_PARALLEL / pl.core_map if plain "parallel" runs on one TC).
    return out


if __name__ == "__main__":
    # Synthetic GaussVector config (RAT-SPN "args"):
    B, num_dims, num_gauss = 4, 32, 8
    scope = list(range(0, num_dims, 2))              # region -> local_size D = 16
    D = len(scope)
    gauss_min_sigma, gauss_max_sigma = 0.1, 1.0      # min < max => sigma_params path
    gauss_max_mean, gauss_min_mean = None, None

    key = jax.random.PRNGKey(0)
    k_in, k_marg, k_mu, k_sig = jax.random.split(key, 4)
    inputs = jax.random.normal(k_in, (B, num_dims), dtype=jnp.float32)
    marginalized = (jax.random.uniform(k_marg, (B, num_dims)) < 0.25).astype(jnp.float32)
    # init_params(): normal(mean=gauss_mean_of_means=0.0, std=0.1)
    means = 0.1 * jax.random.normal(k_mu, (D, num_gauss), dtype=jnp.float32)
    sigma_params = 0.1 * jax.random.normal(k_sig, (D, num_gauss), dtype=jnp.float32)

    sc = jnp.asarray(scope)
    x_l = inputs[:, sc][:, :, None]

    # --- path 1: learned sigma + marginalization mask ---
    out = gauss_vector_forward(inputs, marginalized, means, sigma_params, scope,
                               gauss_min_sigma, gauss_max_sigma,
                               gauss_max_mean, gauss_min_mean)
    out = jax.block_until_ready(out)

    mg_l = jnp.clip(marginalized, 0.0, 1.0)[:, sc][:, :, None]
    sigma = gauss_min_sigma + (gauss_max_sigma - gauss_min_sigma) * jax.nn.sigmoid(sigma_params)
    scale = jnp.sqrt(sigma)
    lp = (-0.5 * ((x_l - means) / scale) ** 2 - jnp.log(scale) - 0.5 * jnp.log(2.0 * jnp.pi))
    ref = jnp.sum(lp * (1.0 - mg_l), axis=1)
    assert out.shape == (B, num_gauss)
    assert jnp.allclose(out, ref, atol=1e-4, rtol=1e-4), (out, ref)

    # --- path 2: fixed sigma = 1.0 (min_sigma >= max_sigma), no marginalization ---
    out2 = gauss_vector_forward(inputs, None, means, None, scope,
                                min_sigma=1.0, max_sigma=1.0)
    out2 = jax.block_until_ready(out2)
    lp2 = -0.5 * (x_l - means) ** 2 - 0.5 * jnp.log(2.0 * jnp.pi)
    ref2 = jnp.sum(lp2, axis=1)
    assert jnp.allclose(out2, ref2, atol=1e-4, rtol=1e-4), (out2, ref2)

    # --- path 3: multi-step grid with a ragged last batch tile (no jnp.pad path) ---
    B3 = 300
    inputs3 = jax.random.normal(jax.random.PRNGKey(1), (B3, num_dims), dtype=jnp.float32)
    out3 = gauss_vector_forward(inputs3, None, means, sigma_params, scope,
                                gauss_min_sigma, gauss_max_sigma, block_b=128)
    out3 = jax.block_until_ready(out3)
    x3 = inputs3[:, sc][:, :, None]
    lp3 = -0.5 * ((x3 - means) / scale) ** 2 - jnp.log(scale) - 0.5 * jnp.log(2.0 * jnp.pi)
    ref3 = jnp.sum(lp3, axis=1)
    assert out3.shape == (B3, num_gauss)
    assert jnp.allclose(out3, ref3, atol=1e-4, rtol=1e-4), (out3, ref3)

    print("KERNEL_OK")
</pallas_src>

<mosaic_0001>
module attributes {stable_mosaic.version = 11 : i64} {
  func.func @_gauss_vector_kernel(%arg0: i32, %arg1: memref<8x32xf32, #tpu.memory_space<vmem>>, %arg2: memref<48x8xf32, #tpu.memory_space<vmem>>, %arg3: memref<8x8xf32, #tpu.memory_space<vmem>>) attributes {dimension_semantics = [#tpu.dimension_semantics<parallel>], iteration_bounds = array<i64: 1>, scalar_prefetch = 0 : i64, scratch_operands = 0 : i64, tpu.core_type = #tpu.core_type<tc>, window_params = [{transform_indices = @transform_0, window_bounds = array<i64: 8, 32>}, {pipeline_mode = #tpu.pipeline_mode<synchronous>, transform_indices = @transform_1, window_bounds = array<i64: 48, 8>}, {transform_indices = @transform_2, window_bounds = array<i64: 8, 8>}]} {
    %c0 = arith.constant 0 : index
    %c0_0 = arith.constant 0 : index
    %0 = vector.load %arg1[%c0, %c0_0] : memref<8x32xf32, #tpu.memory_space<vmem>>, vector<8x32xf32>
    %1 = vector.extract_strided_slice %0 {offsets = [0, 0], sizes = [8, 16], strides = [1, 1]} : vector<8x32xf32> to vector<8x16xf32>
    %2 = vector.extract_strided_slice %0 {offsets = [0, 16], sizes = [8, 16], strides = [1, 1]} : vector<8x32xf32> to vector<8x16xf32>
    %3 = arith.mulf %2, %1 : vector<8x16xf32>
    %4 = arith.mulf %3, %1 : vector<8x16xf32>
    %5 = tpu.concatenate %4, %3, %2 in 1 : vector<8x16xf32>, vector<8x16xf32>, vector<8x16xf32> -> vector<8x48xf32>
    %c0_1 = arith.constant 0 : index
    %c0_2 = arith.constant 0 : index
    %6 = vector.load %arg2[%c0_1, %c0_2] : memref<48x8xf32, #tpu.memory_space<vmem>>, vector<48x8xf32>
    %cst = arith.constant dense<0.000000e+00> : vector<8x8xf32>
    %7 = tpu.matmul %5, %6, %cst {dimension_numbers = #tpu.dot_dimension_numbers<[1], [0], [0], [1], [0, 0, 1, 1], [], []>} : vector<8x48xf32>, vector<48x8xf32>, vector<8x8xf32> -> vector<8x8xf32>
    %c0_3 = arith.constant 0 : index
    %c0_4 = arith.constant 0 : index
    %8 = vector.load %arg3[%c0_3, %c0_4] : memref<8x8xf32, #tpu.memory_space<vmem>>, vector<8x8xf32>
    tpu.vector_store %arg3[%c0_3, %c0_4], %7 {strides = array<i32>} : memref<8x8xf32, #tpu.memory_space<vmem>>, vector<8x8xf32>,
    return
  }
  func.func @transform_0(%arg0: i32) -> (i32, i32) {
    %c0_i32 = arith.constant 0 : i32
    %c0_i32_0 = arith.constant 0 : i32
    return %arg0, %c0_i32 : i32, i32
  }
  func.func @transform_1(%arg0: i32) -> (i32, i32) {
    %c0_i32 = arith.constant 0 : i32
    %c0_i32_0 = arith.constant 0 : i32
    %c0_i32_1 = arith.constant 0 : i32
    return %c0_i32, %c0_i32_0 : i32, i32
  }
  func.func @transform_2(%arg0: i32) -> (i32, i32) {
    %c0_i32 = arith.constant 0 : i32
    %c0_i32_0 = arith.constant 0 : i32
    return %arg0, %c0_i32 : i32, i32
  }
}

</mosaic_0001>

<bundles_post_ra>
// kernel: tpu_custom_call.1
= control target key start
LH: loop header
LB: loop body
LE: loop exit
PB: predicated region body
PF: predicated region fallthrough
CT: control target
= control target key end

     0   :  { %s245_s0 = inlined_call_operand.vmem [shape: f32[4,32], index: 0, kind: input, shape index: {}]   ;;  %s246_s1 = inlined_call_operand.vmem [shape: f32[48,8], index: 1, kind: input, shape index: {}]   ;;  %s247_s2 = inlined_call_operand.hbm [shape: f32[4,8], index: 2, kind: output, shape index: {}]  }
   0x1   :  { %v12_v0 = vld [vmem:[%s245_s0] sm:$0xff] }
   0x2   :  { %7 = vsyncpa [#allocation3], 0  ;;  %s189_s11 = smov 16   ;;  %v190_v1 = vmov 0.0|0.0   ;;  %v27_v2 = vld [vmem:[%s246_s1] sm:$0xff]  ;;  %v28_v3 = vld [vmem:[%s246_s1 + $0x8] sm:$0xff] }
   0x3   :  { %14 = vrot.lane.b32.xlu0 %v12_v0, %s189_s11  ;;  %148 = vmatprep.subr.bf16.mxu0 %v190_v1  ;;  %v29_v4 = vld [vmem:[%s246_s1 + $0x10] sm:$0xff]  ;;  %v149_v5 = vpack.c.bf16 %v28_v3, %v27_v2  ;;  %v30_v6 = vld [vmem:[%s246_s1 + $0x18] sm:$0xff]  ;;  %v31_v8 = vld [vmem:[%s246_s1 + $0x20] sm:$0xff]  ;;  %vm191_vm0 = vmmov 0   ;;  %v192_v11 = vmov 0.0   ;;  %s193_s23 = smov 112  }
   0x4   :  { %v152_v7 = vpack.c.bf16 %v30_v6, %v29_v4  ;;  %v32_v9 = vld [vmem:[%s246_s1 + $0x28] sm:$0xff]  ;;  %145 = vmatprep.mubr.msk.f32.mxu0 %vm191_vm0, %v192_v11  ;;  %vm23_vm1 = vcmask 130048   ;;  %vm25_vm2 = vcmask 261120   ;;  %vm33_vm3 = vcmask 392192  }
   0x5   :  { %150 = vmatpush3.bf16.msra.mxu0 %v149_v5  ;;  %v155_v10 = vpack.c.bf16 %v32_v9, %v31_v8  ;;  %vm107_vm4 = vcmask 64512  }
   0x6   :  { %151 = vmatprep.subr.bf16.mxu0 %v190_v1 }
   0x9   :  { %153 = vmatpush3.bf16.msra.mxu0 %v152_v7 }
   0xa   :  { %154 = vmatprep.subr.bf16.mxu0 %v190_v1 }
   0xd   :  { %156 = vmatpush3.bf16.msra.mxu0 %v155_v10 }
  0x75   :  { %v15_v12 = vpop.permute.xlu0 %14 }
  0x76   :  { %v17_v13 = vmul.f32 %v15_v12, %v12_v0 }
  0x78   :  { %v18_v14 = vmul.f32 %v17_v13, %v15_v12 }
  0x7a   :  { %20 = vrot.lane.b32.xlu0 %v18_v14, %s193_s23 }
  0xec   :  { %v21_v15 = vpop.permute.xlu0 %20 }
  0xed   :  { %v24_v16 = vsel %vm23_vm1, %v21_v15, %v17_v13 }
  0xee   :  { %v26_v17 = vsel %vm25_vm2, %v24_v16, %v15_v12 }
  0xef   :  { %146 = vmatmul.mubr.msk.f32.vlgmr.msra.gmra.mrb[0].mxu0 %vm33_vm3, %v26_v17 }
 0x1c2   :  { %v103_v18 = vpop.f32.mrb[0].mxu0 }
 0x1c3   :  { %108 = vst.msk [vmem:[#allocation2] sm:$0xff] %vm107_vm4, %v103_v18  ;;  %v147_v19 = vpop.f32.mrb[1].mxu0 }
 0x1c4   :  { %113 = vsyncadd [#allocation3], 64  ;;  %s194_s1 = smov [#allocation2]  }
 0x1c5   :  { %s114_s24 = sshll.u32 %s194_s1, 4  ;;  %s115_s24 = int_to_ptr.vmem [resolvable:$true] %s114_s24 }
 0x1c6   :  { %s165_s25 = scalar_lea.vmem %s115_s24, 64  ;;  %s169_s26 = scalar_lea.vmem %s115_s24, 128 }
 0x1c7   :  { %p166_p0 = scmp.ne.s32.totalorder %s115_s24, %s165_s25  ;;  %p170_p1 = scmp.lt.s32.totalorder %s115_s24, %s115_s24 }
 0x1c8   :  { %p171_p2 = scmp.lt.s32.totalorder %s169_s26, %s165_s25 }
 0x1ca   :  { %p172_p3 = por %p171_p2, %p170_p1 }
 0x1cc   :  { %p173_p4 = pnand %p172_p3, %p166_p0 }
 0x1ce   :  { %176 = shalt.err (!%p173_p4)
}
 0x1cf   :  { %s177_s29 = scalar_lea.hbm %s247_s2, 64 }
 0x1d0   :  { %p178_p5 = scmp.ne.s32.totalorder %s247_s2, %s177_s29  ;;  %p181_p6 = scmp.lt.u32.totalorder %s177_s29, %s247_s2 }
 0x1d2   :  { %p183_p7 = pnand %p181_p6, %p178_p5 }
 0x1d4   :  { %186 = shalt.err (!%p183_p7)
}
 0x1d5   :  { %s195_s6 = smov 64   ;;  %s196_s7 = smov 4  }
 0x1d6   :  { %120 = dma.vmem_to_hbm [thread:$0]  %s115_s24, 64, %s247_s2, [#allocation3], %s195_s6, %s195_s6, %s196_s7  }
 0x1d7   :  { %187 = dma.done.wait [#allocation3], 128  }
 0x1d8   :  { %188 = vsyncadd [#allocation3], 4294967168 }
 0x1d9   :  { %124 = vsyncpa [#allocation3], 1 }

</bundles_post_ra>
